<compile_context>
chip_gen: v5e
topology: v5e:2x2
jax: 0.10.0
libtpu: 0.0.40
codegen_flags: <defaults>
</compile_context>

<pallas_src>
import functools

import jax
import jax.numpy as jnp
from jax.experimental import pallas as pl
from jax.experimental.pallas import tpu as pltpu


def _round_up(v, m):
    return ((v + m - 1) // m) * m


def _actor_kernel(x_ref, w1_ref, b1_ref, w2_ref, b2_ref, w3_ref, b3_ref, out_ref,
                  *, compute_dtype):
    # ---- fc1 + ReLU: K is tiny (4), so do K rank-1 broadcast-FMAs on the VPU
    # instead of paying MXU push/pop latency for a K=4 contraction.
    x = x_ref[...]                                   # (tb, K)   f32
    w1 = w1_ref[...]                                 # (K, H1)   f32
    k_dim = w1.shape[0]
    h1 = b1_ref[...] + x[:, 0:1] * w1[0:1, :]        # -> (tb, H1), f32
    for k in range(1, k_dim):                        # static unroll (K - 1 FMAs)
        h1 = h1 + x[:, k:k + 1] * w1[k:k + 1, :]
    h1 = jnp.maximum(h1, 0.0)

    # ---- fc2 + ReLU: MXU matmul, bf16 operands / f32 accumulation, f32 epilogue.
    h2 = jnp.dot(h1.astype(compute_dtype), w2_ref[...],
                 preferred_element_type=jnp.float32)
    h2 = jnp.maximum(h2 + b2_ref[...], 0.0)

    # ---- fc3 (lane-padded to 128 outputs): MXU matmul, f32 accumulation.
    out = jnp.dot(h2.astype(compute_dtype), w3_ref[...],
                  preferred_element_type=jnp.float32) + b3_ref[...]
    out_ref[...] = out.astype(out_ref.dtype)


@functools.partial(jax.jit, static_argnames=("tile_b", "compute_dtype"))
def actor_forward(x, w1, b1, w2, b2, w3, b3, *, tile_b=256,
                  compute_dtype=jnp.bfloat16):
    """3-layer MLP forward in one Pallas call, tiled over the batch dimension."""
    B, k_dim = x.shape
    h1_dim = w1.shape[1]
    h2_dim = w2.shape[1]
    out_dim = w3.shape[1]

    # Lane-dense padding of the narrow (2-wide) fc3 output -> unmasked stores.
    n_pad = _round_up(max(out_dim, 128), 128)
    w3p = jnp.pad(w3, ((0, 0), (0, n_pad - out_dim))).astype(compute_dtype)
    b3p = jnp.pad(b3, ((0, 0), (0, n_pad - out_dim)))

    # The only non-trivial HBM transfer is w2 (and padded w3): ship them bf16.
    w2c = w2.astype(compute_dtype)

    # Batch tiling: pad B to a multiple of the batch tile (multiple of 8).
    tb = min(tile_b, _round_up(B, 8))
    b_pad = _round_up(B, tb)
    xp = jnp.pad(x, ((0, b_pad - B), (0, 0))) if b_pad != B else x

    # Weights/biases: full-array blocks with constant block index -> fetched
    # once, VMEM-resident across all batch grid steps.
    resident = lambda shape: pl.BlockSpec(shape, lambda i, _s=shape: (0,) * len(_s))

    out = pl.pallas_call(
        functools.partial(_actor_kernel, compute_dtype=compute_dtype),
        out_shape=jax.ShapeDtypeStruct((b_pad, n_pad), jnp.float32),
        grid=(b_pad // tb,),
        in_specs=[
            pl.BlockSpec((tb, k_dim), lambda i: (i, 0)),       # x: pipelined tiles
            resident(w1.shape), resident(b1.shape),
            resident((h1_dim, h2_dim)), resident(b2.shape),
            resident((h2_dim, n_pad)), resident((1, n_pad)),
        ],
        out_specs=pl.BlockSpec((tb, n_pad), lambda i: (i, 0)),
        compiler_params=pltpu.CompilerParams(
            dimension_semantics=("parallel",)),                # 2 TCs on v7x
    )(xp, w1, b1, w2c, b2, w3p, b3p)

    # Slice away batch padding and the lane padding of the 2-wide output.
    return out[:B, :out_dim]


def init_actor_params(key, input_size=4, hidden_size_1=256, hidden_size_2=256,
                      output_size=2, dtype=jnp.float32):
    """Deterministic init mimicking PyTorch nn.Linear (uniform +-1/sqrt(fan_in)).

    Weights are stored transposed relative to PyTorch: (in_features, out_features).
    """
    keys = jax.random.split(key, 6)

    def linear(kw, kb, fan_in, fan_out):
        bound = 1.0 / jnp.sqrt(jnp.asarray(fan_in, dtype))
        w = jax.random.uniform(kw, (fan_in, fan_out), dtype, -bound, bound)
        b = jax.random.uniform(kb, (1, fan_out), dtype, -bound, bound)
        return w, b

    w1, b1 = linear(keys[0], keys[1], input_size, hidden_size_1)
    w2, b2 = linear(keys[2], keys[3], hidden_size_1, hidden_size_2)
    w3, b3 = linear(keys[4], keys[5], hidden_size_2, output_size)
    return w1, b1, w2, b2, w3, b3


def actor_forward_ref(x, w1, b1, w2, b2, w3, b3, compute_dtype=jnp.float32):
    """Pure-JAX reference (same semantics as the PyTorch module).

    With compute_dtype=bf16 it mirrors the kernel's mixed precision (bf16 MXU
    operands for fc2/fc3, f32 accumulation, f32 fc1 and epilogues).
    """
    h1 = jax.nn.relu(x @ w1 + b1)
    h2 = jax.nn.relu(jnp.dot(h1.astype(compute_dtype), w2.astype(compute_dtype),
                             preferred_element_type=jnp.float32) + b2)
    return jnp.dot(h2.astype(compute_dtype), w3.astype(compute_dtype),
                   preferred_element_type=jnp.float32) + b3


if __name__ == "__main__":
    key = jax.random.PRNGKey(0)
    k_params, k_x = jax.random.split(key)

    # Small batch of CartPole-like observations: (batch=8, input_size=4)
    x = jax.random.normal(k_x, (8, 4), dtype=jnp.float32)
    params = init_actor_params(k_params)

    out = jax.block_until_ready(actor_forward(x, *params))
    assert out.shape == (8, 2), out.shape

    ref_matched = actor_forward_ref(x, *params, compute_dtype=jnp.bfloat16)
    ref_f32 = actor_forward_ref(x, *params, compute_dtype=jnp.float32)
    assert jnp.allclose(out, ref_matched, atol=1e-2, rtol=1e-2), \
        "mismatch vs matched-precision JAX reference"
    assert jnp.allclose(out, ref_f32, atol=5e-2, rtol=5e-2), \
        "mismatch vs f32 JAX reference"

    print("KERNEL_OK")
</pallas_src>

<mosaic_0001>
module attributes {stable_mosaic.version = 11 : i64} {
  func.func @_actor_kernel(%arg0: i32, %arg1: memref<8x4xf32, #tpu.memory_space<vmem>>, %arg2: memref<4x256xf32, #tpu.memory_space<vmem>>, %arg3: memref<1x256xf32, #tpu.memory_space<vmem>>, %arg4: memref<256x256xbf16, #tpu.memory_space<vmem>>, %arg5: memref<1x256xf32, #tpu.memory_space<vmem>>, %arg6: memref<256x128xbf16, #tpu.memory_space<vmem>>, %arg7: memref<1x128xf32, #tpu.memory_space<vmem>>, %arg8: memref<8x128xf32, #tpu.memory_space<vmem>>) attributes {dimension_semantics = [#tpu.dimension_semantics<parallel>], iteration_bounds = array<i64: 1>, scalar_prefetch = 0 : i64, scratch_operands = 0 : i64, tpu.core_type = #tpu.core_type<tc>, window_params = [{transform_indices = @transform_0, window_bounds = array<i64: 8, 4>}, {pipeline_mode = #tpu.pipeline_mode<synchronous>, transform_indices = @transform_1, window_bounds = array<i64: 4, 256>}, {pipeline_mode = #tpu.pipeline_mode<synchronous>, transform_indices = @transform_2, window_bounds = array<i64: 1, 256>}, {pipeline_mode = #tpu.pipeline_mode<synchronous>, transform_indices = @transform_3, window_bounds = array<i64: 256, 256>}, {pipeline_mode = #tpu.pipeline_mode<synchronous>, transform_indices = @transform_4, window_bounds = array<i64: 1, 256>}, {pipeline_mode = #tpu.pipeline_mode<synchronous>, transform_indices = @transform_5, window_bounds = array<i64: 256, 128>}, {pipeline_mode = #tpu.pipeline_mode<synchronous>, transform_indices = @transform_6, window_bounds = array<i64: 1, 128>}, {transform_indices = @transform_7, window_bounds = array<i64: 8, 128>}]} {
    %c0 = arith.constant 0 : index
    %c0_0 = arith.constant 0 : index
    %0 = vector.load %arg1[%c0, %c0_0] : memref<8x4xf32, #tpu.memory_space<vmem>>, vector<8x4xf32>
    %c0_1 = arith.constant 0 : index
    %c0_2 = arith.constant 0 : index
    %1 = vector.load %arg2[%c0_1, %c0_2] : memref<4x256xf32, #tpu.memory_space<vmem>>, vector<4x256xf32>
    %c0_3 = arith.constant 0 : index
    %c0_4 = arith.constant 0 : index
    %2 = vector.load %arg3[%c0_3, %c0_4] : memref<1x256xf32, #tpu.memory_space<vmem>>, vector<1x256xf32>
    %3 = vector.extract_strided_slice %0 {offsets = [0, 0], sizes = [8, 1], strides = [1, 1]} : vector<8x4xf32> to vector<8x1xf32>
    %4 = vector.extract_strided_slice %1 {offsets = [0, 0], sizes = [1, 256], strides = [1, 1]} : vector<4x256xf32> to vector<1x256xf32>
    %5 = vector.broadcast %3 : vector<8x1xf32> to vector<8x256xf32>
    %6 = vector.broadcast %4 : vector<1x256xf32> to vector<8x256xf32>
    %7 = arith.mulf %5, %6 : vector<8x256xf32>
    %8 = vector.broadcast %2 : vector<1x256xf32> to vector<8x256xf32>
    %9 = arith.addf %8, %7 : vector<8x256xf32>
    %10 = vector.extract_strided_slice %0 {offsets = [0, 1], sizes = [8, 1], strides = [1, 1]} : vector<8x4xf32> to vector<8x1xf32>
    %11 = vector.extract_strided_slice %1 {offsets = [1, 0], sizes = [1, 256], strides = [1, 1]} : vector<4x256xf32> to vector<1x256xf32>
    %12 = vector.broadcast %10 : vector<8x1xf32> to vector<8x256xf32>
    %13 = vector.broadcast %11 : vector<1x256xf32> to vector<8x256xf32>
    %14 = arith.mulf %12, %13 : vector<8x256xf32>
    %15 = arith.addf %9, %14 : vector<8x256xf32>
    %16 = vector.extract_strided_slice %0 {offsets = [0, 2], sizes = [8, 1], strides = [1, 1]} : vector<8x4xf32> to vector<8x1xf32>
    %17 = vector.extract_strided_slice %1 {offsets = [2, 0], sizes = [1, 256], strides = [1, 1]} : vector<4x256xf32> to vector<1x256xf32>
    %18 = vector.broadcast %16 : vector<8x1xf32> to vector<8x256xf32>
    %19 = vector.broadcast %17 : vector<1x256xf32> to vector<8x256xf32>
    %20 = arith.mulf %18, %19 : vector<8x256xf32>
    %21 = arith.addf %15, %20 : vector<8x256xf32>
    %22 = vector.extract_strided_slice %0 {offsets = [0, 3], sizes = [8, 1], strides = [1, 1]} : vector<8x4xf32> to vector<8x1xf32>
    %23 = vector.extract_strided_slice %1 {offsets = [3, 0], sizes = [1, 256], strides = [1, 1]} : vector<4x256xf32> to vector<1x256xf32>
    %24 = vector.broadcast %22 : vector<8x1xf32> to vector<8x256xf32>
    %25 = vector.broadcast %23 : vector<1x256xf32> to vector<8x256xf32>
    %26 = arith.mulf %24, %25 : vector<8x256xf32>
    %27 = arith.addf %21, %26 : vector<8x256xf32>
    %cst = arith.constant 0.000000e+00 : f32
    %28 = vector.broadcast %cst : f32 to vector<8x256xf32>
    %29 = arith.maximumf %27, %28 : vector<8x256xf32>
    %30 = arith.truncf %29 : vector<8x256xf32> to vector<8x256xbf16>
    %c0_5 = arith.constant 0 : index
    %c0_6 = arith.constant 0 : index
    %31 = vector.load %arg4[%c0_5, %c0_6] : memref<256x256xbf16, #tpu.memory_space<vmem>>, vector<256x256xbf16>
    %cst_7 = arith.constant dense<0.000000e+00> : vector<8x256xf32>
    %32 = tpu.matmul %30, %31, %cst_7 {dimension_numbers = #tpu.dot_dimension_numbers<[1], [0], [0], [1], [0, 0, 1, 1], [], []>} : vector<8x256xbf16>, vector<256x256xbf16>, vector<8x256xf32> -> vector<8x256xf32>
    %c0_8 = arith.constant 0 : index
    %c0_9 = arith.constant 0 : index
    %33 = vector.load %arg5[%c0_8, %c0_9] : memref<1x256xf32, #tpu.memory_space<vmem>>, vector<1x256xf32>
    %34 = vector.broadcast %33 : vector<1x256xf32> to vector<8x256xf32>
    %35 = arith.addf %32, %34 : vector<8x256xf32>
    %cst_10 = arith.constant 0.000000e+00 : f32
    %36 = vector.broadcast %cst_10 : f32 to vector<8x256xf32>
    %37 = arith.maximumf %35, %36 : vector<8x256xf32>
    %38 = arith.truncf %37 : vector<8x256xf32> to vector<8x256xbf16>
    %c0_11 = arith.constant 0 : index
    %c0_12 = arith.constant 0 : index
    %39 = vector.load %arg6[%c0_11, %c0_12] : memref<256x128xbf16, #tpu.memory_space<vmem>>, vector<256x128xbf16>
    %cst_13 = arith.constant dense<0.000000e+00> : vector<8x128xf32>
    %40 = tpu.matmul %38, %39, %cst_13 {dimension_numbers = #tpu.dot_dimension_numbers<[1], [0], [0], [1], [0, 0, 1, 1], [], []>} : vector<8x256xbf16>, vector<256x128xbf16>, vector<8x128xf32> -> vector<8x128xf32>
    %c0_14 = arith.constant 0 : index
    %c0_15 = arith.constant 0 : index
    %41 = vector.load %arg7[%c0_14, %c0_15] : memref<1x128xf32, #tpu.memory_space<vmem>>, vector<1x128xf32>
    %42 = vector.broadcast %41 : vector<1x128xf32> to vector<8x128xf32>
    %43 = arith.addf %40, %42 : vector<8x128xf32>
    %c0_16 = arith.constant 0 : index
    %c0_17 = arith.constant 0 : index
    %44 = vector.load %arg8[%c0_16, %c0_17] : memref<8x128xf32, #tpu.memory_space<vmem>>, vector<8x128xf32>
    tpu.vector_store %arg8[%c0_16, %c0_17], %43 {strides = array<i32>} : memref<8x128xf32, #tpu.memory_space<vmem>>, vector<8x128xf32>,
    return
  }
  func.func @transform_0(%arg0: i32) -> (i32, i32) {
    %c0_i32 = arith.constant 0 : i32
    %c0_i32_0 = arith.constant 0 : i32
    return %arg0, %c0_i32 : i32, i32
  }
  func.func @transform_1(%arg0: i32) -> (i32, i32) {
    %c0_i32 = arith.constant 0 : i32
    %c0_i32_0 = arith.constant 0 : i32
    %c0_i32_1 = arith.constant 0 : i32
    return %c0_i32, %c0_i32_0 : i32, i32
  }
  func.func @transform_2(%arg0: i32) -> (i32, i32) {
    %c0_i32 = arith.constant 0 : i32
    %c0_i32_0 = arith.constant 0 : i32
    %c0_i32_1 = arith.constant 0 : i32
    return %c0_i32, %c0_i32_0 : i32, i32
  }
  func.func @transform_3(%arg0: i32) -> (i32, i32) {
    %c0_i32 = arith.constant 0 : i32
    %c0_i32_0 = arith.constant 0 : i32
    %c0_i32_1 = arith.constant 0 : i32
    return %c0_i32, %c0_i32_0 : i32, i32
  }
  func.func @transform_4(%arg0: i32) -> (i32, i32) {
    %c0_i32 = arith.constant 0 : i32
    %c0_i32_0 = arith.constant 0 : i32
    %c0_i32_1 = arith.constant 0 : i32
    return %c0_i32, %c0_i32_0 : i32, i32
  }
  func.func @transform_5(%arg0: i32) -> (i32, i32) {
    %c0_i32 = arith.constant 0 : i32
    %c0_i32_0 = arith.constant 0 : i32
    %c0_i32_1 = arith.constant 0 : i32
    return %c0_i32, %c0_i32_0 : i32, i32
  }
  func.func @transform_6(%arg0: i32) -> (i32, i32) {
    %c0_i32 = arith.constant 0 : i32
    %c0_i32_0 = arith.constant 0 : i32
    %c0_i32_1 = arith.constant 0 : i32
    return %c0_i32, %c0_i32_0 : i32, i32
  }
  func.func @transform_7(%arg0: i32) -> (i32, i32) {
    %c0_i32 = arith.constant 0 : i32
    %c0_i32_0 = arith.constant 0 : i32
    return %arg0, %c0_i32 : i32, i32
  }
}

</mosaic_0001>

<bundles_post_ra>
// kernel: actor_forward.1
= control target key start
LH: loop header
LB: loop body
LE: loop exit
PB: predicated region body
PF: predicated region fallthrough
CT: control target
= control target key end

     0   :  { %v763_v0 = vmov 0   ;;  %v764_v2 = vmov 2   ;;  %v765_v37 = vmov 1   ;;  %v766_v38 = vmov 3   ;;  %s1065_s0 = inlined_call_operand.vmem [shape: f32[8,4], index: 0, kind: input, shape index: {}]   ;;  %s1066_s3 = inlined_call_operand.vmem [shape: bf16[256,256], index: 3, kind: input, shape index: {}]   ;;  %s1067_s5 = inlined_call_operand.vmem [shape: bf16[256,128], index: 5, kind: input, shape index: {}]   ;;  %s1068_s1 = inlined_call_operand.vmem [shape: f32[4,256], index: 1, kind: input, shape index: {}]   ;;  %s1069_s2 = inlined_call_operand.vmem [shape: f32[1,256], index: 2, kind: input, shape index: {}]   ;;  %s1070_s6 = inlined_call_operand.vmem [shape: f32[1,128], index: 6, kind: input, shape index: {}]   ;;  %s1071_s4 = inlined_call_operand.vmem [shape: f32[1,256], index: 4, kind: input, shape index: {}]   ;;  %s1072_s7 = inlined_call_operand.vmem [shape: f32[8,128], index: 7, kind: output, shape index: {}]  }
   0x1   :  { %757 = vset.pattern.permute.xlu0 %v763_v0  ;;  %v26_v1 = vld [vmem:[%s1065_s0] sm:$0xff]  ;;  %759 = vset.pattern.permute.xlu1 %v764_v2  ;;  %v571_v3 = vld [vmem:[%s1066_s3 + $0x70] sm:$0xf]  ;;  %v720_v4 = vld [vmem:[%s1066_s3 + $0x74] sm:$0xf0] }
   0x2   :  { %31 = vperm.xlu0 %757, %v26_v1   ;;  %65 = vperm.xlu1 %759, %v26_v1   ;;  %v572_v5 = vor.u32 %v720_v4, %v571_v3  ;;  %v635_v6 = vld [vmem:[%s1066_s3 + $0xf0] sm:$0xf]  ;;  %v736_v7 = vld [vmem:[%s1066_s3 + $0xf4] sm:$0xf0]  ;;  %v719_v8 = vld [vmem:[%s1066_s3 + $0x74] sm:$0xf] }
   0x3   :  { %v636_v9 = vor.u32 %v736_v7, %v635_v6  ;;  %v573_v10 = vld [vmem:[%s1066_s3 + $0x78] sm:$0xf0]  ;;  %v735_v11 = vld [vmem:[%s1066_s3 + $0xf4] sm:$0xf]  ;;  %v563_v15 = vld [vmem:[%s1066_s3 + $0x60] sm:$0xf] }
   0x4   :  { %v637_v12 = vld [vmem:[%s1066_s3 + $0xf8] sm:$0xf0]  ;;  %294 = vmatpush.bf16.msra.mxu0 %v572_v5  ;;  %v576_v13 = vor.u32 %v719_v8, %v573_v10  ;;  %v718_v16 = vld [vmem:[%s1066_s3 + $0x64] sm:$0xf0]  ;;  %v627_v17 = vld [vmem:[%s1066_s3 + $0xe0] sm:$0xf] }
   0x5   :  { %v640_v14 = vor.u32 %v735_v11, %v637_v12  ;;  %307 = vmatpush.bf16.msra.mxu1 %v636_v9  ;;  %v564_v18 = vor.u32 %v718_v16, %v563_v15  ;;  %v734_v19 = vld [vmem:[%s1066_s3 + $0xe4] sm:$0xf0]  ;;  %v717_v20 = vld [vmem:[%s1066_s3 + $0x64] sm:$0xf]  ;;  %v565_v21 = vld [vmem:[%s1066_s3 + $0x68] sm:$0xf0] }
   0x6   :  { %320 = vmatpush.bf16.msra.mxu2 %v576_v13  ;;  %v628_v22 = vor.u32 %v734_v19, %v627_v17  ;;  %v733_v23 = vld [vmem:[%s1066_s3 + $0xe4] sm:$0xf]  ;;  %v629_v24 = vld [vmem:[%s1066_s3 + $0xe8] sm:$0xf0]  ;;  %v555_v25 = vld [vmem:[%s1066_s3 + $0x50] sm:$0xf]  ;;  %v568_v29 = vor.u32 %v717_v20, %v565_v21 }
   0x7   :  { %333 = vmatpush.bf16.msra.mxu3 %v640_v14  ;;  %v716_v26 = vld [vmem:[%s1066_s3 + $0x54] sm:$0xf0]  ;;  %v619_v27 = vld [vmem:[%s1066_s3 + $0xd0] sm:$0xf]  ;;  %v632_v30 = vor.u32 %v733_v23, %v629_v24  ;;  %v715_v31 = vld [vmem:[%s1066_s3 + $0x54] sm:$0xf] }
   0x8   :  { %v732_v28 = vld [vmem:[%s1066_s3 + $0xd4] sm:$0xf0]  ;;  %295 = vmatpush.bf16.msra.mxu0 %v564_v18  ;;  %v556_v32 = vor.u32 %v716_v26, %v555_v25  ;;  %v557_v34 = vld [vmem:[%s1066_s3 + $0x58] sm:$0xf0]  ;;  %v731_v35 = vld [vmem:[%s1066_s3 + $0xd4] sm:$0xf] }
   0x9   :  { %308 = vmatpush.bf16.msra.mxu1 %v628_v22  ;;  %v620_v33 = vor.u32 %v732_v28, %v619_v27  ;;  %v621_v36 = vld [vmem:[%s1066_s3 + $0xd8] sm:$0xf0]  ;;  %v560_v39 = vor.u32 %v715_v31, %v557_v34  ;;  %v547_v41 = vld [vmem:[%s1066_s3 + $0x40] sm:$0xf]  ;;  %v714_v42 = vld [vmem:[%s1066_s3 + $0x44] sm:$0xf0] }
   0xa   :  { %758 = vset.pattern.permute.xlu0 %v765_v37  ;;  %760 = vset.pattern.permute.xlu1 %v766_v38  ;;  %v624_v40 = vor.u32 %v731_v35, %v621_v36  ;;  %v611_v43 = vld [vmem:[%s1066_s3 + $0xc0] sm:$0xf]  ;;  %v548_v44 = vor.u32 %v714_v42, %v547_v41  ;;  %v730_v45 = vld [vmem:[%s1066_s3 + $0xc4] sm:$0xf0]  ;;  %v713_v46 = vld [vmem:[%s1066_s3 + $0x44] sm:$0xf] }
   0xb   :  { %51 = vperm.xlu0 %758, %v26_v1   ;;  %79 = vperm.xlu1 %760, %v26_v1   ;;  %v549_v47 = vld [vmem:[%s1066_s3 + $0x48] sm:$0xf0]  ;;  %v612_v48 = vor.u32 %v730_v45, %v611_v43  ;;  %v729_v50 = vld [vmem:[%s1066_s3 + $0xc4] sm:$0xf]  ;;  %v539_v53 = vld [vmem:[%s1066_s3 + $0x30] sm:$0xf] }
   0xc   :  { %321 = vmatpush.bf16.msra.mxu2 %v568_v29  ;;  %334 = vmatpush.bf16.msra.mxu3 %v632_v30  ;;  %v552_v49 = vor.u32 %v713_v46, %v549_v47  ;;  %v613_v51 = vld [vmem:[%s1066_s3 + $0xc8] sm:$0xf0]  ;;  %v712_v54 = vld [vmem:[%s1066_s3 + $0x34] sm:$0xf0]  ;;  %v603_v55 = vld [vmem:[%s1066_s3 + $0xb0] sm:$0xf] }
   0xd   :  { %296 = vmatpush.bf16.msra.mxu0 %v556_v32  ;;  %309 = vmatpush.bf16.msra.mxu1 %v620_v33  ;;  %v616_v52 = vor.u32 %v729_v50, %v613_v51  ;;  %v540_v56 = vor.u32 %v712_v54, %v539_v53  ;;  %v728_v57 = vld [vmem:[%s1066_s3 + $0xb4] sm:$0xf0]  ;;  %v711_v58 = vld [vmem:[%s1066_s3 + $0x34] sm:$0xf]  ;;  %v541_v60 = vld [vmem:[%s1066_s3 + $0x38] sm:$0xf0] }
   0xe   :  { %v604_v59 = vor.u32 %v728_v57, %v603_v55  ;;  %v727_v61 = vld [vmem:[%s1066_s3 + $0xb4] sm:$0xf]  ;;  %v605_v62 = vld [vmem:[%s1066_s3 + $0xb8] sm:$0xf0]  ;;  %v544_v63 = vor.u32 %v711_v58, %v541_v60  ;;  %v531_v1 = vld [vmem:[%s1066_s3 + $0x20] sm:$0xf] }
   0xf   :  { %v608_v0 = vor.u32 %v727_v61, %v605_v62  ;;  %v710_v2 = vld [vmem:[%s1066_s3 + $0x24] sm:$0xf0]  ;;  %v595_v4 = vld [vmem:[%s1066_s3 + $0xa0] sm:$0xf]  ;;  %v709_v6 = vld [vmem:[%s1066_s3 + $0x24] sm:$0xf] }
  0x10   :  { %322 = vmatpush.bf16.msra.mxu2 %v560_v39  ;;  %335 = vmatpush.bf16.msra.mxu3 %v624_v40  ;;  %v532_v3 = vor.u32 %v710_v2, %v531_v1  ;;  %v726_v5 = vld [vmem:[%s1066_s3 + $0xa4] sm:$0xf0]  ;;  %v533_v8 = vld [vmem:[%s1066_s3 + $0x28] sm:$0xf0]  ;;  %v725_v9 = vld [vmem:[%s1066_s3 + $0xa4] sm:$0xf] }
  0x11   :  { %297 = vmatpush.bf16.msra.mxu0 %v548_v44  ;;  %310 = vmatpush.bf16.msra.mxu1 %v612_v48  ;;  %v596_v7 = vor.u32 %v726_v5, %v595_v4  ;;  %v597_v10 = vld [vmem:[%s1066_s3 + $0xa8] sm:$0xf0]  ;;  %v536_v11 = vor.u32 %v709_v6, %v533_v8  ;;  %v523_v13 = vld [vmem:[%s1066_s3 + $0x10] sm:$0xf]  ;;  %v708_v14 = vld [vmem:[%s1066_s3 + $0x14] sm:$0xf0] }
  0x12   :  { %v600_v12 = vor.u32 %v725_v9, %v597_v10  ;;  %v587_v15 = vld [vmem:[%s1066_s3 + $0x90] sm:$0xf]  ;;  %v524_v16 = vor.u32 %v708_v14, %v523_v13  ;;  %v724_v17 = vld [vmem:[%s1066_s3 + $0x94] sm:$0xf0]  ;;  %v707_v18 = vld [vmem:[%s1066_s3 + $0x14] sm:$0xf] }
  0x13   :  { %761 = vset.pattern.permute.xlu0 %v766_v38  ;;  %v588_v19 = vor.u32 %v724_v17, %v587_v15  ;;  %v525_v20 = vld [vmem:[%s1066_s3 + $0x18] sm:$0xf0]  ;;  %v723_v21 = vld [vmem:[%s1066_s3 + $0x94] sm:$0xf]  ;;  %v515_v25 = vld [vmem:[%s1066_s3] sm:$0xf] }
  0x14   :  { %323 = vmatpush.bf16.msra.mxu2 %v552_v49  ;;  %336 = vmatpush.bf16.msra.mxu3 %v616_v52  ;;  %v589_v22 = vld [vmem:[%s1066_s3 + $0x98] sm:$0xf0]  ;;  %v528_v23 = vor.u32 %v707_v18, %v525_v20  ;;  %v706_v26 = vld [vmem:[%s1066_s3 + $0x4] sm:$0xf0]  ;;  %v579_v27 = vld [vmem:[%s1066_s3 + $0x80] sm:$0xf] }
  0x15   :  { %298 = vmatpush.bf16.msra.mxu0 %v540_v56  ;;  %311 = vmatpush.bf16.msra.mxu1 %v604_v59  ;;  %v592_v24 = vor.u32 %v723_v21, %v589_v22  ;;  %v516_v28 = vor.u32 %v706_v26, %v515_v25  ;;  %v722_v29 = vld [vmem:[%s1066_s3 + $0x84] sm:$0xf0]  ;;  %v705_v30 = vld [vmem:[%s1066_s3 + $0x4] sm:$0xf]  ;;  %v517_v31 = vld [vmem:[%s1066_s3 + $0x8] sm:$0xf0] }
  0x16   :  { %v580_v32 = vor.u32 %v722_v29, %v579_v27  ;;  %v520_v33 = vor.u32 %v705_v30, %v517_v31  ;;  %v721_v34 = vld [vmem:[%s1066_s3 + $0x84] sm:$0xf]  ;;  %v581_v35 = vld [vmem:[%s1066_s3 + $0x88] sm:$0xf0]  ;;  %v744_v37 = vld [vmem:[%s1067_s5 + $0x38] sm:$0xff] }
  0x17   :  { %v584_v36 = vor.u32 %v721_v34, %v581_v35  ;;  %v752_v38 = vld [vmem:[%s1067_s5 + $0x78] sm:$0xff]  ;;  %v743_v39 = vld [vmem:[%s1067_s5 + $0x30] sm:$0xff]  ;;  %v27_v41 = vld [vmem:[%s1068_s1] sm:$0xff] }
  0x18   :  { %324 = vmatpush.bf16.msra.mxu2 %v544_v63  ;;  %337 = vmatpush.bf16.msra.mxu3 %v608_v0  ;;  %v751_v40 = vld [vmem:[%s1067_s5 + $0x70] sm:$0xff]  ;;  %v742_v42 = vld [vmem:[%s1067_s5 + $0x28] sm:$0xff]  ;;  %v35_v43 = vperm.slane %v27_v41, 0  ;;  %v36_v44 = vperm.slane %v27_v41, 4  ;;  %v28_v48 = vld [vmem:[%s1069_s2] sm:$0x3] }
  0x19   :  { %299 = vmatpush.bf16.msra.mxu0 %v532_v3  ;;  %312 = vmatpush.bf16.msra.mxu1 %v596_v7  ;;  %v750_v45 = vld [vmem:[%s1067_s5 + $0x68] sm:$0xff]  ;;  %v741_v49 = vld [vmem:[%s1067_s5 + $0x20] sm:$0xff]  ;;  %v54_v52 = vperm.slane %v27_v41, 1  ;;  %v55_v53 = vperm.slane %v27_v41, 5  ;;  %v68_v55 = vperm.slane %v27_v41, 2  ;;  %v69_v56 = vperm.slane %v27_v41, 6 }
  0x1a   :  { %v39_v50 = vperm.slane %v35_v43, 0  ;;  %v40_v51 = vperm.slane %v36_v44, 0  ;;  %v749_v54 = vld [vmem:[%s1067_s5 + $0x60] sm:$0xff]  ;;  %v82_v57 = vperm.slane %v27_v41, 3  ;;  %v83_v58 = vperm.slane %v27_v41, 7  ;;  %v740_v61 = vld [vmem:[%s1067_s5 + $0x18] sm:$0xff] }
  0x1b   :  { %v44_v59 = vperm.slane %v28_v48, 0  ;;  %v45_v60 = vperm.slane %v28_v48, 1  ;;  %v58_v0 = vperm.slane %v54_v52, 1  ;;  %v59_v1 = vperm.slane %v55_v53, 1  ;;  %v739_v8 = vld [vmem:[%s1067_s5 + $0x10] sm:$0xff]  ;;  %v748_v27 = vld [vmem:[%s1067_s5 + $0x58] sm:$0xff] }
  0x1c   :  { %325 = vmatpush.bf16.msra.mxu2 %v536_v11  ;;  %338 = vmatpush.bf16.msra.mxu3 %v600_v12  ;;  %v72_v2 = vperm.slane %v68_v55, 2  ;;  %v73_v3 = vperm.slane %v69_v56, 2  ;;  %v86_v4 = vperm.slane %v82_v57, 3  ;;  %v87_v5 = vperm.slane %v83_v58, 3  ;;  %v747_v29 = vld [vmem:[%s1067_s5 + $0x50] sm:$0xff]  ;;  %v737_v30 = vld [vmem:[%s1067_s5] sm:$0xff] }
  0x1d   :  { %300 = vmatpush.bf16.msra.mxu0 %v524_v16  ;;  %313 = vmatpush.bf16.msra.mxu1 %v588_v19  ;;  %v746_v31 = vld [vmem:[%s1067_s5 + $0x48] sm:$0xff]  ;;  %v762_v53 = vld [vmem:[%s1070_s6] ss:$0 sm:$0xff] }
  0x20   :  { %326 = vmatpush.bf16.msra.mxu2 %v528_v23  ;;  %339 = vmatpush.bf16.msra.mxu3 %v592_v24 }
  0x21   :  { %301 = vmatpush.bf16.msra.mxu0 %v516_v28  ;;  %314 = vmatpush.bf16.msra.mxu1 %v580_v32  ;;  %v738_v28 = vld [vmem:[%s1067_s5 + $0x8] sm:$0xff]  ;;  %v745_v32 = vld [vmem:[%s1067_s5 + $0x40] sm:$0xff] }
  0x24   :  { %327 = vmatpush.bf16.msra.mxu2 %v520_v33  ;;  %340 = vmatpush.bf16.msra.mxu3 %v584_v36  ;;  %v128_v33 = vld [vmem:[%s1071_s4] sm:$0x3] }
  0x25   :  { %482 = vmatpush.bf16.msrb.mxu0 %v744_v37  ;;  %495 = vmatpush.bf16.msrb.mxu1 %v752_v38  ;;  %v130_v34 = vperm.slane %v128_v33, 0 }
  0x29   :  { %483 = vmatpush.bf16.msrb.mxu0 %v743_v39  ;;  %496 = vmatpush.bf16.msrb.mxu1 %v751_v40  ;;  %v131_v39 = vperm.slane %v128_v33, 1 }
  0x2d   :  { %484 = vmatpush.bf16.msrb.mxu0 %v742_v42  ;;  %497 = vmatpush.bf16.msrb.mxu1 %v750_v45 }
  0x31   :  { %485 = vmatpush.bf16.msrb.mxu0 %v741_v49  ;;  %498 = vmatpush.bf16.msrb.mxu1 %v749_v54 }
  0x35   :  { %486 = vmatpush.bf16.msrb.mxu0 %v740_v61  ;;  %499 = vmatpush.bf16.msrb.mxu1 %v748_v27 }
  0x39   :  { %487 = vmatpush.bf16.msrb.mxu0 %v739_v8  ;;  %500 = vmatpush.bf16.msrb.mxu1 %v747_v29 }
  0x3d   :  { %488 = vmatpush.bf16.msrb.mxu0 %v738_v28  ;;  %501 = vmatpush.bf16.msrb.mxu1 %v746_v31 }
  0x41   :  { %489 = vmatpush.bf16.msrb.mxu0 %v737_v30  ;;  %502 = vmatpush.bf16.msrb.mxu1 %v745_v32 }
  0x74   :  { %v32_v46 = vpop.permute.xlu0 %31  ;;  %v66_v47 = vpop.permute.xlu1 %65 }
  0x75   :  { %v41_v62 = vmul.f32 %v39_v50, %v32_v46  ;;  %v42_v63 = vmul.f32 %v40_v51, %v32_v46  ;;  %v74_v13 = vmul.f32 %v72_v2, %v66_v47  ;;  %v75_v14 = vmul.f32 %v73_v3, %v66_v47 }
  0x77   :  { %v48_v9 = vadd.f32 %v44_v59, %v41_v62  ;;  %v49_v10 = vadd.f32 %v45_v60, %v42_v63 }
  0x7d   :  { %v52_v6 = vpop.permute.xlu0 %51  ;;  %v80_v7 = vpop.permute.xlu1 %79 }
  0x7e   :  { %v60_v11 = vmul.f32 %v58_v0, %v52_v6  ;;  %v61_v12 = vmul.f32 %v59_v1, %v52_v6  ;;  %v88_v17 = vmul.f32 %v86_v4, %v80_v7  ;;  %v89_v18 = vmul.f32 %v87_v5, %v80_v7 }
  0x80   :  { %v62_v15 = vadd.f32 %v60_v11, %v48_v9  ;;  %v63_v16 = vadd.f32 %v61_v12, %v49_v10 }
  0x82   :  { %v76_v19 = vadd.f32 %v74_v13, %v62_v15  ;;  %v77_v20 = vadd.f32 %v75_v14, %v63_v16 }
  0x84   :  { %v90_v21 = vadd.f32 %v88_v17, %v76_v19  ;;  %v91_v22 = vadd.f32 %v89_v18, %v77_v20 }
  0x86   :  { %v92_v23 = vmax.f32 %v90_v21, 0.0  ;;  %v93_v24 = vmax.f32 %v91_v22, 0.0 }
  0x88   :  { %v94_v25 = vpack.c.bf16 %v92_v23, %v92_v23  ;;  %v95_v26 = vpack.c.bf16 %v93_v24, %v93_v24 }
  0x8a   :  { %302 = vmatmul.bf16.vlgmr.msra.gmra.mxu0 %v94_v25  ;;  %315 = vmatmul.bf16.vlgmr.msra.gmra.mxu1 %v95_v26 }
  0x8b   :  { %328 = vmatmul.bf16.vlgmr.msra.gmra.mxu2 %v94_v25  ;;  %341 = vmatmul.bf16.vlgmr.msra.gmra.mxu3 %v95_v26 }
 0x107   :  { %v303_v35 = vpop.f32.mrf.mxu0  ;;  %v316_v36 = vpop.f32.mrf.mxu1 }
 0x108   :  { %v304_v37 = vadd.f32 %v303_v35, %v130_v34 }
 0x10a   :  { %v317_v38 = vadd.f32 %v316_v36, %v304_v37 }
 0x10c   :  { %v346_v40 = vmax.f32 %v317_v38, 0.0 }
 0x10e   :  { %v348_v41 = vpack.c.bf16 %v346_v40, %v346_v40  ;;  %v329_v42 = vpop.f32.mrf.mxu2  ;;  %v342_v43 = vpop.f32.mrf.mxu3 }
 0x10f   :  { %v330_v44 = vadd.f32 %v329_v42, %v131_v39  ;;  %v305_v45 = vpop.f32.mrf.mxu0  ;;  %v318_v46 = vpop.f32.mrf.mxu1 }
 0x110   :  { %490 = vmatmul.bf16.vlgmr.msrb.gmra.mxu0 %v348_v41 }
 0x111   :  { %v343_v47 = vadd.f32 %v342_v43, %v330_v44 }
 0x113   :  { %v347_v48 = vmax.f32 %v343_v47, 0.0 }
 0x115   :  { %v349_v49 = vpack.c.bf16 %v347_v48, %v347_v48 }
 0x116   :  { %v331_v50 = vpop.f32.mrf.mxu2  ;;  %v344_v51 = vpop.f32.mrf.mxu3 }
 0x117   :  { %503 = vmatmul.bf16.vlgmr.msrb.gmra.mxu1 %v349_v49 }
 0x18d   :  { %v491_v52 = vpop.f32.mrf.mxu0 }
 0x18e   :  { %v492_v54 = vadd.f32 %v762_v53, %v491_v52 }
 0x194   :  { %v504_v55 = vpop.f32.mrf.mxu1 }
 0x195   :  { %v505_v56 = vadd.f32 %v504_v55, %v492_v54  ;;  %v493_v57 = vpop.f32.mrf.mxu0 }
 0x197   :  { %508 = vst [vmem:[%s1072_s7] sm:$0xff] %v505_v56 }
 0x19c   :  { %v506_v58 = vpop.f32.mrf.mxu1 }

</bundles_post_ra>
